<compile_context>
chip_gen: v6e
topology: v6e:2x2x1
jax: 0.10.0
libtpu: 0.0.40
codegen_flags: <defaults>
</compile_context>

<pallas_src>
import functools

import jax
import jax.numpy as jnp
from jax.experimental import pallas as pl
from jax.experimental.pallas import tpu as pltpu

LN_EPS = 1e-5
_MIB = 1024 * 1024


def _round_up(a, b):
    return (a + b - 1) // b * b


def _pick_pack_factor(F, D, M):
    """Number of consecutive rows packed side-by-side along the 128-lane axis.

    Preference order:
      1. lane-dense output  (P*D % 128 == 0)  -- full-width vst, biggest lever
      2. no host pad/slice  (M % P == 0)      -- avoids 2-3x extra HBM copies
      3. lane-dense input   (P*F % 128 == 0)  -- full-width vld + K=128 matmul
      4. smaller constants  (tie break)
    """
    cands = []
    for P in (1, 2, 4, 8, 16):
        if P > 1 and (P * F > 512 or P * D > 512):
            continue
        key = ((P * D) % 128 == 0, M % P == 0, (P * F) % 128 == 0, -P * max(F, D))
        cands.append((key, P))
    cands.sort()
    return cands[-1][1]


def _embedding_kernel(xp_ref, wg_ref, bg_ref, bt_ref, sb_ref, o_ref):
    # xp_ref: (br, P*F)   P consecutive input rows packed along lanes
    # wg_ref: (P*F, P*D)  block-diagonal, mean-centred, gamma-scaled linear weight
    # bg_ref: (1, P*D)    mean-centred, gamma-scaled bias (tiled P times)
    # bt_ref: (1, P*D)    LayerNorm beta (tiled P times)
    # sb_ref: (P*D, P*D)  block-diagonal variance matrix, rows weighted 1/(D*gamma^2)
    # o_ref:  (br, P*D)   P consecutive output rows packed along lanes
    xp = xp_ref[...]

    # Centered + gamma-scaled pre-activation: LayerNorm mean subtraction and the
    # gamma scale are both folded into Wg/bg, so a single matmul suffices.
    hg = jnp.dot(xp, wg_ref[...], preferred_element_type=jnp.float32) + bg_ref[...]

    # Per-row biased variance of the *unscaled* centred activation (the 1/gamma^2
    # un-scaling is folded into sb), broadcast back across each group of D lanes by
    # the block-diagonal matmul -- stays fully lane-dense, zero cross-lane XLU work.
    var = jnp.dot(hg * hg, sb_ref[...], preferred_element_type=jnp.float32)

    y = hg * jax.lax.rsqrt(var + LN_EPS) + bt_ref[...]

    # ReLU; Dropout == identity (eval mode).
    o_ref[...] = jnp.maximum(y, 0.0).astype(o_ref.dtype)


@functools.partial(jax.jit, static_argnames=("block_step_bytes", "out_dtype"))
def embedding_forward(x, w, b, gamma, beta, *, block_step_bytes=6 * _MIB,
                      out_dtype=jnp.float32):
    """x: (B, T, N, F); w: (F, D); b/gamma/beta: (1, D). Returns (B, T, N, D)."""
    B, T, N, F = x.shape
    D = w.shape[1]
    M = B * T * N
    out_itemsize = jnp.dtype(out_dtype).itemsize

    P = _pick_pack_factor(F, D, M)
    Mp = _round_up(M, P)

    x2d = x.reshape(M, F).astype(jnp.float32)
    if Mp != M:
        # TODO(synk): this pad (and the matching final slice) each cost one extra
        # HBM copy; callers that arrange M % P == 0 skip both entirely.
        x2d = jnp.pad(x2d, ((0, Mp - M), (0, 0)))
    Mr = Mp // P
    xp = x2d.reshape(Mr, P * F)                      # contiguous reshape -- free

    # Fold LayerNorm mean and gamma into the linear layer:
    #   h = x@W + b ; hc = h - mean_D(h) = x@Wc + bc ; hg = hc * gamma
    #   => hg = x @ (Wc*gamma) + bc*gamma ;  var = sum_k hg_k^2 / (D*gamma_k^2)
    g = gamma.reshape(-1).astype(jnp.float32)
    g = jnp.where(jnp.abs(g) < 1e-12, 1e-12, g)      # guard pathological gamma == 0
    w32 = w.astype(jnp.float32)
    wc = w32 - jnp.mean(w32, axis=1, keepdims=True)
    bc = b.reshape(1, D).astype(jnp.float32) - jnp.mean(b.astype(jnp.float32))
    wg = wc * g[None, :]
    bg = bc * g[None, :]

    eye_p = jnp.eye(P, dtype=jnp.float32)
    wg_blk = jnp.kron(eye_p, wg)                                          # (P*F, P*D)
    sb_blk = jnp.kron(eye_p, (1.0 / (D * g * g))[:, None]
                      * jnp.ones((1, D), jnp.float32))                    # (P*D, P*D)
    bg_t = jnp.tile(bg, (1, P))
    bt_t = jnp.tile(beta.reshape(1, D).astype(jnp.float32), (1, P))

    # ---- Row-tile sizing --------------------------------------------------------
    in_row_bytes = P * F * 4
    out_row_bytes = P * D * out_itemsize
    row_bytes = in_row_bytes + out_row_bytes
    # Per-step HBM budget (~2-8 MiB amortises the ~0.35us/step overhead), capped so
    # the double-buffered in+out blocks fit a v7x-safe VMEM budget (64 MiB total).
    vmem_block_cap = 24 * _MIB
    br = max(8, min(block_step_bytes // row_bytes, vmem_block_cap // (2 * row_bytes)))
    br = br // 8 * 8
    if br >= Mr:
        br = Mr                                       # single block == full extent
    grid_m = pl.cdiv(Mr, br)
    # v7x megacore: prefer >=4 grid steps (>=2 pipelined steps per TensorCore) ...
    if grid_m < 4 and Mr >= 32:
        br = max(8, (Mr // 4) // 8 * 8)
        grid_m = pl.cdiv(Mr, br)
    # ... and an even step count so neither core idles on the tail block.
    if 3 <= grid_m <= 12 and grid_m % 2 == 1:
        cand = max(8, _round_up(pl.cdiv(Mr, grid_m + 1), 8))
        if cand < Mr and pl.cdiv(Mr, cand) % 2 == 0:
            br, grid_m = cand, pl.cdiv(Mr, cand)

    const_bytes = 4 * (wg_blk.size + sb_blk.size + bg_t.size + bt_t.size)
    # Double-buffered blocks + (double-buffered) constants + Mosaic scratch slack.
    vmem_need = 2 * br * row_bytes + 2 * const_bytes + 4 * _MIB
    vmem_limit = min(48 * _MIB, max(16 * _MIB, _round_up(vmem_need, _MIB)))

    cost = pl.CostEstimate(
        flops=Mr * (2 * (P * F) * (P * D) + 2 * (P * D) * (P * D) + 6 * P * D),
        transcendentals=Mr * P * D,
        bytes_accessed=Mr * row_bytes + const_bytes,
    )

    out_p = pl.pallas_call(
        _embedding_kernel,
        out_shape=jax.ShapeDtypeStruct((Mr, P * D), out_dtype),
        grid_spec=pltpu.PrefetchScalarGridSpec(
            num_scalar_prefetch=0,
            grid=(grid_m,),
            in_specs=[
                pl.BlockSpec((br, P * F), lambda i: (i, 0)),      # packed x rows
                pl.BlockSpec((P * F, P * D), lambda i: (0, 0)),   # blockdiag Wc*gamma
                pl.BlockSpec((1, P * D), lambda i: (0, 0)),       # centred/scaled bias
                pl.BlockSpec((1, P * D), lambda i: (0, 0)),       # LayerNorm beta
                pl.BlockSpec((P * D, P * D), lambda i: (0, 0)),   # blockdiag 1/(D*g^2)
            ],
            out_specs=pl.BlockSpec((br, P * D), lambda i: (i, 0)),
        ),
        compiler_params=pltpu.CompilerParams(
            dimension_semantics=("parallel",),
            vmem_limit_bytes=vmem_limit,
        ),
        cost_estimate=cost,
    )(xp, wg_blk, bg_t, bt_t, sb_blk)

    out2d = out_p.reshape(Mp, D)                     # contiguous un-pack -- free
    if Mp != M:
        out2d = out2d[:M]
    return out2d.reshape(B, T, N, D)


def reference_forward(x, w, b, gamma, beta):
    B, T, N, F = x.shape
    h = x.reshape(-1, F) @ w + b.reshape(1, -1)
    mu = jnp.mean(h, axis=-1, keepdims=True)
    var = jnp.mean((h - mu) ** 2, axis=-1, keepdims=True)
    hn = (h - mu) / jnp.sqrt(var + LN_EPS)
    y = jnp.maximum(hn * gamma.reshape(1, -1) + beta.reshape(1, -1), 0.0)
    return y.reshape(B, T, N, -1)


if __name__ == "__main__":
    def run_case(key, B, T, N, F, D, *, block_step_bytes=6 * _MIB,
                 out_dtype=jnp.float32, tol=1e-4):
        kx, kw, kb, kg, kt = jax.random.split(key, 5)
        x = jax.random.normal(kx, (B, T, N, F), dtype=jnp.float32)
        # Mimic nn.Linear's uniform(-1/sqrt(F), 1/sqrt(F)) init; non-trivial LN params.
        bound = 1.0 / float(F) ** 0.5
        w = jax.random.uniform(kw, (F, D), jnp.float32, -bound, bound)
        b = jax.random.uniform(kb, (1, D), jnp.float32, -bound, bound)
        gamma = jax.random.uniform(kg, (1, D), jnp.float32, 0.5, 1.5)
        beta = 0.1 * jax.random.normal(kt, (1, D), jnp.float32)

        out = embedding_forward(x, w, b, gamma, beta,
                                block_step_bytes=block_step_bytes,
                                out_dtype=out_dtype)
        out = jax.block_until_ready(out)
        ref = reference_forward(x, w, b, gamma, beta)
        assert out.shape == (B, T, N, D), out.shape
        err = float(jnp.max(jnp.abs(out.astype(jnp.float32) - ref)))
        assert err <= tol, (B, T, N, F, D, err)

    key = jax.random.PRNGKey(0)
    ks = jax.random.split(key, 6)
    # Fully lane-dense packing (P=8: input 128 lanes, output 256 lanes), single step.
    run_case(ks[0], 2, 4, 16, 16, 32)
    # Multi-step parallel grid (small step budget forces br=8 -> 8 even steps).
    run_case(ks[1], 4, 8, 16, 16, 32, block_step_bytes=16 * 1024)
    # Odd feature count, D=64 (P=2); Mr=15 not a multiple of 8, no pad, full-extent block.
    run_case(ks[2], 2, 3, 5, 7, 64)
    # Ragged Mr with several blocks + OOB-masked tail block (Mr=55, br=16 -> 4 steps).
    run_case(ks[3], 2, 5, 11, 7, 64, block_step_bytes=9 * 1024)
    # M=27 triggers the row-pad + final-slice fallback path.
    run_case(ks[4], 1, 3, 9, 16, 32)
    # Opt-in bf16 HBM output (bandwidth saver on v5e/v6e); looser tolerance.
    run_case(ks[5], 2, 4, 16, 16, 32, out_dtype=jnp.bfloat16, tol=6e-2)

    print("KERNEL_OK")
</pallas_src>

<mosaic_0001>
module attributes {stable_mosaic.version = 11 : i64} {
  func.func @_embedding_kernel(%arg0: i32, %arg1: memref<16x128xf32, #tpu.memory_space<vmem>>, %arg2: memref<128x256xf32, #tpu.memory_space<vmem>>, %arg3: memref<1x256xf32, #tpu.memory_space<vmem>>, %arg4: memref<1x256xf32, #tpu.memory_space<vmem>>, %arg5: memref<256x256xf32, #tpu.memory_space<vmem>>, %arg6: memref<16x256xf32, #tpu.memory_space<vmem>>) attributes {dimension_semantics = [#tpu.dimension_semantics<parallel>], iteration_bounds = array<i64: 1>, scalar_prefetch = 0 : i64, scratch_operands = 0 : i64, tpu.core_type = #tpu.core_type<tc>, window_params = [{transform_indices = @transform_0, window_bounds = array<i64: 16, 128>}, {pipeline_mode = #tpu.pipeline_mode<synchronous>, transform_indices = @transform_1, window_bounds = array<i64: 128, 256>}, {pipeline_mode = #tpu.pipeline_mode<synchronous>, transform_indices = @transform_2, window_bounds = array<i64: 1, 256>}, {pipeline_mode = #tpu.pipeline_mode<synchronous>, transform_indices = @transform_3, window_bounds = array<i64: 1, 256>}, {pipeline_mode = #tpu.pipeline_mode<synchronous>, transform_indices = @transform_4, window_bounds = array<i64: 256, 256>}, {transform_indices = @transform_5, window_bounds = array<i64: 16, 256>}]} {
    %c0 = arith.constant 0 : index
    %c0_0 = arith.constant 0 : index
    %0 = vector.load %arg1[%c0, %c0_0] : memref<16x128xf32, #tpu.memory_space<vmem>>, vector<16x128xf32>
    %c0_1 = arith.constant 0 : index
    %c0_2 = arith.constant 0 : index
    %1 = vector.load %arg2[%c0_1, %c0_2] : memref<128x256xf32, #tpu.memory_space<vmem>>, vector<128x256xf32>
    %cst = arith.constant dense<0.000000e+00> : vector<16x256xf32>
    %2 = tpu.matmul %0, %1, %cst {dimension_numbers = #tpu.dot_dimension_numbers<[1], [0], [0], [1], [0, 0, 1, 1], [], []>} : vector<16x128xf32>, vector<128x256xf32>, vector<16x256xf32> -> vector<16x256xf32>
    %c0_3 = arith.constant 0 : index
    %c0_4 = arith.constant 0 : index
    %3 = vector.load %arg3[%c0_3, %c0_4] : memref<1x256xf32, #tpu.memory_space<vmem>>, vector<1x256xf32>
    %4 = vector.broadcast %3 : vector<1x256xf32> to vector<16x256xf32>
    %5 = arith.addf %2, %4 : vector<16x256xf32>
    %6 = arith.mulf %5, %5 : vector<16x256xf32>
    %c0_5 = arith.constant 0 : index
    %c0_6 = arith.constant 0 : index
    %7 = vector.load %arg5[%c0_5, %c0_6] : memref<256x256xf32, #tpu.memory_space<vmem>>, vector<256x256xf32>
    %cst_7 = arith.constant dense<0.000000e+00> : vector<16x256xf32>
    %8 = tpu.matmul %6, %7, %cst_7 {dimension_numbers = #tpu.dot_dimension_numbers<[1], [0], [0], [1], [0, 0, 1, 1], [], []>} : vector<16x256xf32>, vector<256x256xf32>, vector<16x256xf32> -> vector<16x256xf32>
    %cst_8 = arith.constant 9.99999974E-6 : f32
    %9 = vector.broadcast %cst_8 : f32 to vector<16x256xf32>
    %10 = arith.addf %8, %9 : vector<16x256xf32>
    %11 = math.rsqrt %10 : vector<16x256xf32>
    %12 = arith.mulf %5, %11 : vector<16x256xf32>
    %c0_9 = arith.constant 0 : index
    %c0_10 = arith.constant 0 : index
    %13 = vector.load %arg4[%c0_9, %c0_10] : memref<1x256xf32, #tpu.memory_space<vmem>>, vector<1x256xf32>
    %14 = vector.broadcast %13 : vector<1x256xf32> to vector<16x256xf32>
    %15 = arith.addf %12, %14 : vector<16x256xf32>
    %cst_11 = arith.constant 0.000000e+00 : f32
    %16 = vector.broadcast %cst_11 : f32 to vector<16x256xf32>
    %17 = arith.maximumf %15, %16 : vector<16x256xf32>
    %c0_12 = arith.constant 0 : index
    %c0_13 = arith.constant 0 : index
    %18 = vector.load %arg6[%c0_12, %c0_13] : memref<16x256xf32, #tpu.memory_space<vmem>>, vector<16x256xf32>
    tpu.vector_store %arg6[%c0_12, %c0_13], %17 {strides = array<i32>} : memref<16x256xf32, #tpu.memory_space<vmem>>, vector<16x256xf32>,
    return
  }
  func.func @transform_0(%arg0: i32) -> (i32, i32) {
    %c0_i32 = arith.constant 0 : i32
    %c0_i32_0 = arith.constant 0 : i32
    return %arg0, %c0_i32 : i32, i32
  }
  func.func @transform_1(%arg0: i32) -> (i32, i32) {
    %c0_i32 = arith.constant 0 : i32
    %c0_i32_0 = arith.constant 0 : i32
    %c0_i32_1 = arith.constant 0 : i32
    return %c0_i32, %c0_i32_0 : i32, i32
  }
  func.func @transform_2(%arg0: i32) -> (i32, i32) {
    %c0_i32 = arith.constant 0 : i32
    %c0_i32_0 = arith.constant 0 : i32
    %c0_i32_1 = arith.constant 0 : i32
    return %c0_i32, %c0_i32_0 : i32, i32
  }
  func.func @transform_3(%arg0: i32) -> (i32, i32) {
    %c0_i32 = arith.constant 0 : i32
    %c0_i32_0 = arith.constant 0 : i32
    %c0_i32_1 = arith.constant 0 : i32
    return %c0_i32, %c0_i32_0 : i32, i32
  }
  func.func @transform_4(%arg0: i32) -> (i32, i32) {
    %c0_i32 = arith.constant 0 : i32
    %c0_i32_0 = arith.constant 0 : i32
    %c0_i32_1 = arith.constant 0 : i32
    return %c0_i32, %c0_i32_0 : i32, i32
  }
  func.func @transform_5(%arg0: i32) -> (i32, i32) {
    %c0_i32 = arith.constant 0 : i32
    %c0_i32_0 = arith.constant 0 : i32
    return %arg0, %c0_i32 : i32, i32
  }
}

</mosaic_0001>

<bundles_post_ra>
// kernel: embedding_forward.1
= control target key start
LH: loop header
LB: loop body
LE: loop exit
PB: predicated region body
PF: predicated region fallthrough
CT: control target
= control target key end

     0   :  { %v333_v3 = vmov 0.0   ;;  %s678_s1 = inlined_call_operand.vmem [shape: f32[128,256], index: 1, kind: input, shape index: {}]   ;;  %s679_s4 = inlined_call_operand.vmem [shape: f32[256,256], index: 4, kind: input, shape index: {}]   ;;  %s680_s0 = inlined_call_operand.vmem [shape: f32[16,128], index: 0, kind: input, shape index: {}]   ;;  %s681_s2 = inlined_call_operand.vmem [shape: f32[1,256], index: 2, kind: input, shape index: {}]   ;;  %s682_s3 = inlined_call_operand.vmem [shape: f32[1,256], index: 3, kind: input, shape index: {}]   ;;  %s683_s5 = inlined_call_operand.vmem [shape: f32[16,256], index: 5, kind: output, shape index: {}]  }
   0x1   :  { %v53_v0 = vld [vmem:[%s678_s1 + $0xf8] sm:$0xff]  ;;  %v52_v1 = vld [vmem:[%s678_s1 + $0xf0] sm:$0xff]  ;;  %v51_v2 = vld [vmem:[%s678_s1 + $0xe8] sm:$0xff]  ;;  %130 = vmatprep.mubr.f32.mxu0 %v333_v3 }
   0x2   :  { %66 = vmatprep.subr.mxu0 %v53_v0  ;;  %v50_v4 = vld [vmem:[%s678_s1 + $0xe0] sm:$0xff]  ;;  %v49_v5 = vld [vmem:[%s678_s1 + $0xd8] sm:$0xff]  ;;  %v48_v6 = vld [vmem:[%s678_s1 + $0xd0] sm:$0xff] }
   0x3   :  { %67 = vmatpush1.msra.mxu0 %v52_v1  ;;  %v47_v7 = vld [vmem:[%s678_s1 + $0xc8] sm:$0xff]  ;;  %v46_v8 = vld [vmem:[%s678_s1 + $0xc0] sm:$0xff]  ;;  %v45_v9 = vld [vmem:[%s678_s1 + $0xb8] sm:$0xff] }
   0x4   :  { %68 = vmatprep.subr.mxu0 %v51_v2  ;;  %v44_v10 = vld [vmem:[%s678_s1 + $0xb0] sm:$0xff]  ;;  %v43_v11 = vld [vmem:[%s678_s1 + $0xa8] sm:$0xff]  ;;  %v42_v12 = vld [vmem:[%s678_s1 + $0xa0] sm:$0xff] }
   0x5   :  { %69 = vmatpush1.msra.mxu0 %v50_v4  ;;  %v41_v13 = vld [vmem:[%s678_s1 + $0x98] sm:$0xff]  ;;  %v40_v14 = vld [vmem:[%s678_s1 + $0x90] sm:$0xff]  ;;  %v39_v17 = vld [vmem:[%s678_s1 + $0x88] sm:$0xff] }
   0x6   :  { %70 = vmatprep.subr.mxu0 %v49_v5  ;;  %v178_v15 = vld [vmem:[%s679_s4 + $0xf8] sm:$0xff]  ;;  %v177_v16 = vld [vmem:[%s679_s4 + $0xf0] sm:$0xff]  ;;  %v176_v18 = vld [vmem:[%s679_s4 + $0xe8] sm:$0xff] }
   0x7   :  { %71 = vmatpush1.msra.mxu0 %v48_v6  ;;  %211 = vmatprep.subr.mxu1 %v178_v15  ;;  %v175_v19 = vld [vmem:[%s679_s4 + $0xe0] sm:$0xff]  ;;  %v174_v21 = vld [vmem:[%s679_s4 + $0xd8] sm:$0xff]  ;;  %v173_v23 = vld [vmem:[%s679_s4 + $0xd0] sm:$0xff] }
   0x8   :  { %72 = vmatprep.subr.mxu0 %v47_v7  ;;  %v38_v20 = vld [vmem:[%s678_s1 + $0x80] sm:$0xff]  ;;  %212 = vmatpush1.msra.mxu1 %v177_v16  ;;  %v37_v22 = vld [vmem:[%s678_s1 + $0x78] sm:$0xff]  ;;  %v36_v24 = vld [vmem:[%s678_s1 + $0x70] sm:$0xff] }
   0x9   :  { %73 = vmatpush1.msra.mxu0 %v46_v8  ;;  %213 = vmatprep.subr.mxu1 %v176_v18  ;;  %v172_v25 = vld [vmem:[%s679_s4 + $0xc8] sm:$0xff]  ;;  %v171_v27 = vld [vmem:[%s679_s4 + $0xc0] sm:$0xff]  ;;  %v170_v29 = vld [vmem:[%s679_s4 + $0xb8] sm:$0xff] }
   0xa   :  { %74 = vmatprep.subr.mxu0 %v45_v9  ;;  %214 = vmatpush1.msra.mxu1 %v175_v19  ;;  %v35_v26 = vld [vmem:[%s678_s1 + $0x68] sm:$0xff]  ;;  %v34_v28 = vld [vmem:[%s678_s1 + $0x60] sm:$0xff]  ;;  %v33_v30 = vld [vmem:[%s678_s1 + $0x58] sm:$0xff] }
   0xb   :  { %75 = vmatpush1.msra.mxu0 %v44_v10  ;;  %215 = vmatprep.subr.mxu1 %v174_v21  ;;  %v169_v31 = vld [vmem:[%s679_s4 + $0xb0] sm:$0xff]  ;;  %v168_v33 = vld [vmem:[%s679_s4 + $0xa8] sm:$0xff]  ;;  %v167_v35 = vld [vmem:[%s679_s4 + $0xa0] sm:$0xff] }
   0xc   :  { %76 = vmatprep.subr.mxu0 %v43_v11  ;;  %216 = vmatpush1.msra.mxu1 %v173_v23  ;;  %v32_v32 = vld [vmem:[%s678_s1 + $0x50] sm:$0xff]  ;;  %v31_v34 = vld [vmem:[%s678_s1 + $0x48] sm:$0xff]  ;;  %v30_v36 = vld [vmem:[%s678_s1 + $0x40] sm:$0xff] }
   0xd   :  { %77 = vmatpush1.msra.mxu0 %v42_v12  ;;  %217 = vmatprep.subr.mxu1 %v172_v25  ;;  %v166_v37 = vld [vmem:[%s679_s4 + $0x98] sm:$0xff]  ;;  %v165_v39 = vld [vmem:[%s679_s4 + $0x90] sm:$0xff]  ;;  %v164_v41 = vld [vmem:[%s679_s4 + $0x88] sm:$0xff] }
   0xe   :  { %78 = vmatprep.subr.mxu0 %v41_v13  ;;  %218 = vmatpush1.msra.mxu1 %v171_v27  ;;  %v29_v38 = vld [vmem:[%s678_s1 + $0x38] sm:$0xff]  ;;  %v28_v40 = vld [vmem:[%s678_s1 + $0x30] sm:$0xff]  ;;  %v27_v42 = vld [vmem:[%s678_s1 + $0x28] sm:$0xff] }
   0xf   :  { %79 = vmatpush1.msra.mxu0 %v40_v14  ;;  %219 = vmatprep.subr.mxu1 %v170_v29  ;;  %v163_v43 = vld [vmem:[%s679_s4 + $0x80] sm:$0xff]  ;;  %v162_v45 = vld [vmem:[%s679_s4 + $0x78] sm:$0xff]  ;;  %v161_v47 = vld [vmem:[%s679_s4 + $0x70] sm:$0xff] }
  0x10   :  { %80 = vmatprep.subr.mxu0 %v39_v17  ;;  %220 = vmatpush1.msra.mxu1 %v169_v31  ;;  %v26_v44 = vld [vmem:[%s678_s1 + $0x20] sm:$0xff]  ;;  %v25_v46 = vld [vmem:[%s678_s1 + $0x18] sm:$0xff]  ;;  %v24_v48 = vld [vmem:[%s678_s1 + $0x10] sm:$0xff] }
  0x11   :  { %81 = vmatpush1.msra.mxu0 %v38_v20  ;;  %221 = vmatprep.subr.mxu1 %v168_v33  ;;  %v160_v49 = vld [vmem:[%s679_s4 + $0x68] sm:$0xff]  ;;  %v159_v51 = vld [vmem:[%s679_s4 + $0x60] sm:$0xff]  ;;  %v158_v53 = vld [vmem:[%s679_s4 + $0x58] sm:$0xff] }
  0x12   :  { %82 = vmatprep.subr.mxu0 %v37_v22  ;;  %222 = vmatpush1.msra.mxu1 %v167_v35  ;;  %v23_v50 = vld [vmem:[%s678_s1 + $0x8] sm:$0xff]  ;;  %v22_v52 = vld [vmem:[%s678_s1] sm:$0xff]  ;;  %v157_v55 = vld [vmem:[%s679_s4 + $0x50] sm:$0xff]  ;;  %v56_v35 = vlaneseq }
  0x13   :  { %83 = vmatpush1.msra.mxu0 %v36_v24  ;;  %223 = vmatprep.subr.mxu1 %v166_v37  ;;  %v20_v54 = vld [vmem:[%s680_s0] sm:$0xff]  ;;  %v156_v56 = vld [vmem:[%s679_s4 + $0x48] sm:$0xff]  ;;  %v154_v58 = vld [vmem:[%s679_s4 + $0x38] sm:$0xff] }
  0x14   :  { %84 = vmatprep.subr.mxu0 %v35_v26  ;;  %224 = vmatpush1.msra.mxu1 %v165_v39  ;;  %v155_v57 = vld [vmem:[%s679_s4 + $0x40] sm:$0xff]  ;;  %v21_v59 = vld [vmem:[%s680_s0 + $0x8] sm:$0xff]  ;;  %v153_v60 = vld [vmem:[%s679_s4 + $0x30] sm:$0xff] }
  0x15   :  { %85 = vmatpush1.msra.mxu0 %v34_v28  ;;  %225 = vmatprep.subr.mxu1 %v164_v41  ;;  %v152_v61 = vld [vmem:[%s679_s4 + $0x28] sm:$0xff]  ;;  %v151_v62 = vld [vmem:[%s679_s4 + $0x20] sm:$0xff]  ;;  %v150_v63 = vld [vmem:[%s679_s4 + $0x18] sm:$0xff] }
  0x16   :  { %86 = vmatprep.subr.mxu0 %v33_v30  ;;  %226 = vmatpush1.msra.mxu1 %v163_v43  ;;  %v149_v0 = vld [vmem:[%s679_s4 + $0x10] sm:$0xff]  ;;  %v148_v1 = vld [vmem:[%s679_s4 + $0x8] sm:$0xff]  ;;  %v147_v2 = vld [vmem:[%s679_s4] sm:$0xff] }
  0x17   :  { %87 = vmatpush1.msra.mxu0 %v32_v32  ;;  %227 = vmatprep.subr.mxu1 %v162_v45  ;;  %v209_v4 = vld [vmem:[%s679_s4 + $0x1f0] sm:$0xff]  ;;  %v208_v5 = vld [vmem:[%s679_s4 + $0x1e8] sm:$0xff]  ;;  %v207_v6 = vld [vmem:[%s679_s4 + $0x1e0] sm:$0xff] }
  0x18   :  { %88 = vmatprep.subr.mxu0 %v31_v34  ;;  %228 = vmatpush1.msra.mxu1 %v161_v47  ;;  %v206_v7 = vld [vmem:[%s679_s4 + $0x1d8] sm:$0xff]  ;;  %v205_v8 = vld [vmem:[%s679_s4 + $0x1d0] sm:$0xff]  ;;  %v204_v9 = vld [vmem:[%s679_s4 + $0x1c8] sm:$0xff] }
  0x19   :  { %89 = vmatpush1.msra.mxu0 %v30_v36  ;;  %229 = vmatprep.subr.mxu1 %v160_v49  ;;  %v203_v10 = vld [vmem:[%s679_s4 + $0x1c0] sm:$0xff]  ;;  %v202_v11 = vld [vmem:[%s679_s4 + $0x1b8] sm:$0xff]  ;;  %v201_v12 = vld [vmem:[%s679_s4 + $0x1b0] sm:$0xff]  ;;  %v57_v36 = vshrl.u32 %v56_v35, 7 }
  0x1a   :  { %90 = vmatprep.subr.mxu0 %v29_v38  ;;  %230 = vmatpush1.msra.mxu1 %v159_v51  ;;  %v200_v13 = vld [vmem:[%s679_s4 + $0x1a8] sm:$0xff]  ;;  %v199_v14 = vld [vmem:[%s679_s4 + $0x1a0] sm:$0xff]  ;;  %v198_v15 = vld [vmem:[%s679_s4 + $0x198] sm:$0xff] }
  0x1b   :  { %91 = vmatpush1.msra.mxu0 %v28_v40  ;;  %231 = vmatprep.subr.mxu1 %v158_v53  ;;  %v197_v16 = vld [vmem:[%s679_s4 + $0x190] sm:$0xff]  ;;  %v196_v17 = vld [vmem:[%s679_s4 + $0x188] sm:$0xff]  ;;  %v195_v18 = vld [vmem:[%s679_s4 + $0x180] sm:$0xff]  ;;  %v58_v37 = vsub.s32 0, %v57_v36  ;;  %v62_v39 = vsub.s32 1, %v57_v36 }
  0x1c   :  { %92 = vmatprep.subr.mxu0 %v27_v42  ;;  %232 = vmatpush1.msra.mxu1 %v157_v55  ;;  %v194_v19 = vld [vmem:[%s679_s4 + $0x178] sm:$0xff]  ;;  %v193_v20 = vld [vmem:[%s679_s4 + $0x170] sm:$0xff]  ;;  %v192_v21 = vld [vmem:[%s679_s4 + $0x168] sm:$0xff] }
  0x1d   :  { %93 = vmatpush1.msra.mxu0 %v26_v44  ;;  %233 = vmatprep.subr.mxu1 %v156_v56  ;;  %v191_v22 = vld [vmem:[%s679_s4 + $0x160] sm:$0xff]  ;;  %v190_v23 = vld [vmem:[%s679_s4 + $0x158] sm:$0xff]  ;;  %v189_v24 = vld [vmem:[%s679_s4 + $0x150] sm:$0xff] }
  0x1e   :  { %94 = vmatprep.subr.mxu0 %v25_v46  ;;  %234 = vmatpush1.msra.mxu1 %v155_v57  ;;  %v188_v25 = vld [vmem:[%s679_s4 + $0x148] sm:$0xff]  ;;  %v187_v26 = vld [vmem:[%s679_s4 + $0x140] sm:$0xff]  ;;  %v186_v27 = vld [vmem:[%s679_s4 + $0x138] sm:$0xff] }
  0x1f   :  { %95 = vmatpush1.msra.mxu0 %v24_v48  ;;  %235 = vmatprep.subr.mxu1 %v154_v58  ;;  %v185_v28 = vld [vmem:[%s679_s4 + $0x130] sm:$0xff]  ;;  %v184_v29 = vld [vmem:[%s679_s4 + $0x128] sm:$0xff]  ;;  %v183_v30 = vld [vmem:[%s679_s4 + $0x120] sm:$0xff] }
  0x20   :  { %96 = vmatprep.subr.mxu0 %v23_v50  ;;  %236 = vmatpush1.msra.mxu1 %v153_v60  ;;  %v182_v31 = vld [vmem:[%s679_s4 + $0x118] sm:$0xff]  ;;  %v181_v32 = vld [vmem:[%s679_s4 + $0x110] sm:$0xff]  ;;  %v180_v33 = vld [vmem:[%s679_s4 + $0x108] sm:$0xff] }
  0x21   :  { %97 = vmatpush1.msra.mxu0 %v22_v52  ;;  %237 = vmatprep.subr.mxu1 %v152_v61  ;;  %v179_v34 = vld [vmem:[%s679_s4 + $0x100] sm:$0xff] }
  0x22   :  { %131 = vmatmul.mubr.f32.vlgmr.msra.gmra.mxu0 %v20_v54  ;;  %238 = vmatpush1.msra.mxu1 %v151_v62  ;;  %v54_v38 = vld [vmem:[%s681_s2] sm:$0x3] }
  0x23   :  { %136 = vmatprep.mubr.f32.mxu0 %v333_v3  ;;  %239 = vmatprep.subr.mxu1 %v150_v63  ;;  %v210_v3 = vld [vmem:[%s679_s4 + $0x1f8] sm:$0xff]  ;;  %v59_v40 = vrot.slane %v54_v38, %v58_v37  ;;  %v63_v41 = vrot.slane %v54_v38, %v62_v39  ;;  %v296_v62 = vld [vmem:[%s682_s3] sm:$0x3] }
  0x24   :  { %240 = vmatpush1.msra.mxu1 %v149_v0  ;;  %v301_v63 = vrot.slane %v296_v62, %v58_v37 }
  0x25   :  { %241 = vmatprep.subr.mxu1 %v148_v1  ;;  %v305_v1 = vrot.slane %v296_v62, %v62_v39 }
  0x26   :  { %137 = vmatmul.mubr.f32.gmra.mxu0 %v21_v59  ;;  %242 = vmatpush1.msra.mxu1 %v147_v2 }
  0x27   :  { %243 = vmatprep.subr.mxu1 %v210_v3 }
  0x28   :  { %244 = vmatpush2.msra.mxu1 %v209_v4 }
  0x29   :  { %245 = vmatprep.subr.mxu1 %v208_v5 }
  0x2a   :  { %246 = vmatpush2.msra.mxu1 %v207_v6 }
  0x2b   :  { %247 = vmatprep.subr.mxu1 %v206_v7 }
  0x2c   :  { %248 = vmatpush2.msra.mxu1 %v205_v8 }
  0x2d   :  { %249 = vmatprep.subr.mxu1 %v204_v9 }
  0x2e   :  { %250 = vmatpush2.msra.mxu1 %v203_v10 }
  0x2f   :  { %251 = vmatprep.subr.mxu1 %v202_v11 }
  0x30   :  { %252 = vmatpush2.msra.mxu1 %v201_v12 }
  0x31   :  { %253 = vmatprep.subr.mxu1 %v200_v13 }
  0x32   :  { %254 = vmatpush2.msra.mxu1 %v199_v14 }
  0x33   :  { %255 = vmatprep.subr.mxu1 %v198_v15 }
  0x34   :  { %256 = vmatpush2.msra.mxu1 %v197_v16 }
  0x35   :  { %257 = vmatprep.subr.mxu1 %v196_v17 }
  0x36   :  { %258 = vmatpush2.msra.mxu1 %v195_v18 }
  0x37   :  { %259 = vmatprep.subr.mxu1 %v194_v19 }
  0x38   :  { %260 = vmatpush2.msra.mxu1 %v193_v20 }
  0x39   :  { %261 = vmatprep.subr.mxu1 %v192_v21 }
  0x3a   :  { %262 = vmatpush2.msra.mxu1 %v191_v22 }
  0x3b   :  { %263 = vmatprep.subr.mxu1 %v190_v23 }
  0x3c   :  { %264 = vmatpush2.msra.mxu1 %v189_v24 }
  0x3d   :  { %265 = vmatprep.subr.mxu1 %v188_v25 }
  0x3e   :  { %266 = vmatpush2.msra.mxu1 %v187_v26 }
  0x3f   :  { %267 = vmatprep.subr.mxu1 %v186_v27 }
  0x40   :  { %268 = vmatpush2.msra.mxu1 %v185_v28 }
  0x41   :  { %269 = vmatprep.subr.mxu1 %v184_v29 }
  0x42   :  { %270 = vmatpush2.msra.mxu1 %v183_v30 }
  0x43   :  { %271 = vmatprep.subr.mxu1 %v182_v31 }
  0x44   :  { %272 = vmatpush2.msra.mxu1 %v181_v32 }
  0x45   :  { %273 = vmatprep.subr.mxu1 %v180_v33 }
  0x46   :  { %274 = vmatpush2.msra.mxu1 %v179_v34 }
  0xe2   :  { %v132_v42 = vpop.f32.mrf.mxu0 }
  0xe3   :  { %v133_v43 = vadd.f32 %v132_v42, %v59_v40 }
  0xe4   :  { %v134_v44 = vpop.f32.mrf.mxu0 }
  0xe5   :  { %v135_v45 = vadd.f32 %v134_v44, %v63_v41  ;;  %v143_v48 = vmul.f32 %v133_v43, %v133_v43 }
  0xe6   :  { %v138_v46 = vpop.f32.mrf.mxu0 }
  0xe7   :  { %v144_v47 = vmul.f32 %v135_v45, %v135_v45  ;;  %v139_v49 = vadd.f32 %v138_v46, %v59_v40 }
  0xe8   :  { %v140_v50 = vpop.f32.mrf.mxu0 }
  0xe9   :  { %v141_v51 = vadd.f32 %v140_v50, %v63_v41  ;;  %275 = vmatprep.mubr.f32.mxu1 %v144_v47  ;;  %v145_v53 = vmul.f32 %v139_v49, %v139_v49 }
  0xea   :  { %276 = vmatmul.mubr.f32.vlgmr.msra.gmra.mxu1 %v143_v48 }
  0xeb   :  { %v146_v52 = vmul.f32 %v141_v51, %v141_v51 }
  0xed   :  { %281 = vmatprep.mubr.f32.mxu1 %v146_v52 }
  0xee   :  { %282 = vmatmul.mubr.f32.gmra.mxu1 %v145_v53 }
 0x1aa   :  { %v277_v54 = vpop.f32.mrf.mxu1 }
 0x1ab   :  { %v278_v55 = vadd.f32 1e-05, %v277_v54 }
 0x1ac   :  { %v279_v56 = vpop.f32.mrf.mxu1 }
 0x1ad   :  { %325 = vrsqrt.f32 %v278_v55  ;;  %v280_v57 = vadd.f32 1e-05, %v279_v56 }
 0x1ae   :  { %v283_v58 = vpop.f32.mrf.mxu1 }
 0x1af   :  { %327 = vrsqrt.f32 %v280_v57  ;;  %v284_v59 = vadd.f32 1e-05, %v283_v58 }
 0x1b0   :  { %v285_v60 = vpop.f32.mrf.mxu1 }
 0x1b1   :  { %329 = vrsqrt.f32 %v284_v59  ;;  %v286_v61 = vadd.f32 1e-05, %v285_v60 }
 0x1b3   :  { %331 = vrsqrt.f32 %v286_v61 }
 0x1ba   :  { %v326_v0 = vpop.eup %325 }
 0x1bb   :  { %v292_v2 = vmul.f32 %v326_v0, %v133_v43 }
 0x1bc   :  { %v328_v3 = vpop.eup %327 }
 0x1bd   :  { %v308_v4 = vadd.f32 %v301_v63, %v292_v2  ;;  %v293_v5 = vmul.f32 %v328_v3, %v135_v45 }
 0x1be   :  { %v330_v6 = vpop.eup %329 }
 0x1bf   :  { %v312_v7 = vmax.f32 %v308_v4, 0.0  ;;  %v309_v8 = vadd.f32 %v305_v1, %v293_v5  ;;  %v294_v9 = vmul.f32 %v330_v6, %v139_v49 }
 0x1c0   :  { %v332_v10 = vpop.eup %331 }
 0x1c1   :  { %316 = vst [vmem:[%s683_s5] sm:$0xff] %v312_v7  ;;  %v313_v11 = vmax.f32 %v309_v8, 0.0  ;;  %v310_v12 = vadd.f32 %v301_v63, %v294_v9  ;;  %v295_v13 = vmul.f32 %v332_v10, %v141_v51 }
 0x1c3   :  { %317 = vst [vmem:[%s683_s5 + $0x8] sm:$0xff] %v313_v11  ;;  %v314_v14 = vmax.f32 %v310_v12, 0.0  ;;  %v311_v15 = vadd.f32 %v305_v1, %v295_v13 }
 0x1c5   :  { %318 = vst [vmem:[%s683_s5 + $0x10] sm:$0xff] %v314_v14  ;;  %v315_v16 = vmax.f32 %v311_v15, 0.0 }
 0x1c7   :  { %319 = vst [vmem:[%s683_s5 + $0x18] sm:$0xff] %v315_v16 }

</bundles_post_ra>
